<compile_context>
chip_gen: v6e
topology: v6e:2x2x1
jax: 0.10.0
libtpu: 0.0.40
codegen_flags: <defaults>
</compile_context>

<pallas_src>
import math

import numpy as np
import jax
import jax.numpy as jnp
from jax import lax
from jax.experimental import pallas as pl
from jax.experimental.pallas import tpu as pltpu


# ---------------------------------------------------------------------------
# Config (mirrors the fields the PyTorch module reads)
# ---------------------------------------------------------------------------
EMBED_DIM = 32
NUM_HEADS = 4
HEAD_DIM = EMBED_DIM // NUM_HEADS
MLP_RATIO = 4.0
MLP_HIDDEN = int(EMBED_DIM * MLP_RATIO)        # 128
TEMPERATURE = 0.7
LN_EPS = 1e-5

BATCH = 2
SEQ = 8
BN = BATCH * SEQ                               # 16 rows
NJ = BATCH * NUM_HEADS * SEQ                   # 64 (batch, head, key) slots

# ---- weight slab layout: (EMBED_DIM, 384) = [qkv_w | proj_w | w1 | w2^T] ----
_QKV0, _QKV1 = 0, 3 * EMBED_DIM                # 0:96
_PRJ0, _PRJ1 = _QKV1, _QKV1 + EMBED_DIM        # 96:128
_W10, _W11 = _PRJ1, _PRJ1 + MLP_HIDDEN         # 128:256
_W2T0, _W2T1 = _W11, _W11 + MLP_HIDDEN         # 256:384
W_SLAB_COLS = _W2T1                            # 384

# ---- vector slab layout: (8, 128), one vector per row, lane 0 aligned ------
_ROW_LN1G, _ROW_LN1B, _ROW_LN2G, _ROW_LN2B, _ROW_PRJB, _ROW_B2, _ROW_B1 = range(7)

# ---- mask slab layout: (NJ, 256) -------------------------------------------
_MH2_OFF = 0        # (64, 64)  per-head feature mask for [K|V] replication
_D_OFF = 64         # (64, 64)  head-group mask for the softmax denominator
_R_OFF = 128        # (64, 16)  row-replication matrix (b,h,m) <- b*N+m
_BM_OFF = 192       # (16, 64)  same-batch mask on the score columns
MSK_SLAB_COLS = 256


def _gelu_exact(x):
    # nn.GELU() default = exact erf formulation.
    return 0.5 * x * (1.0 + lax.erf(x * (1.0 / math.sqrt(2.0))))


# ---------------------------------------------------------------------------
# Pallas kernel: the whole block (all batches, all heads) in one invocation
# ---------------------------------------------------------------------------
def nkat_block_kernel(x_ref, vec_ref, w_ref, msk_ref, o_ref):
    C = EMBED_DIM
    x = x_ref[...].astype(jnp.float32)                         # (BN, C)

    # ---- unpack vector slab (one vreg) ----
    ln1_g = vec_ref[_ROW_LN1G:_ROW_LN1G + 1, 0:C]
    ln1_b = vec_ref[_ROW_LN1B:_ROW_LN1B + 1, 0:C]
    ln2_g = vec_ref[_ROW_LN2G:_ROW_LN2G + 1, 0:C]
    ln2_b = vec_ref[_ROW_LN2B:_ROW_LN2B + 1, 0:C]
    proj_b = vec_ref[_ROW_PRJB:_ROW_PRJB + 1, 0:C]
    b2 = vec_ref[_ROW_B2:_ROW_B2 + 1, 0:C]
    b1 = vec_ref[_ROW_B1:_ROW_B1 + 1, 0:MLP_HIDDEN]

    # ---- unpack weight slab ----
    qkv_w = w_ref[:, _QKV0:_QKV1]       # (C, 3C), Q columns pre-scaled
    proj_w = w_ref[:, _PRJ0:_PRJ1]      # (C, C)
    w1 = w_ref[:, _W10:_W11]            # (C, H)
    w2t = w_ref[:, _W2T0:_W2T1]         # (C, H)  == w2^T

    # ---- unpack constant-mask slab ----
    head_mask = msk_ref[:, _MH2_OFF:_MH2_OFF + 2 * C]          # (NJ, 2C)
    denom_mask = msk_ref[:, _D_OFF:_D_OFF + NJ]                # (NJ, NJ)
    rep_mat = msk_ref[:, _R_OFF:_R_OFF + BN]                   # (NJ, BN)
    batch_mask = msk_ref[0:BN, _BM_OFF:_BM_OFF + NJ]           # (BN, NJ)

    # ---------------- Attention branch: x + attn(norm1(x)) ----------------
    mu = jnp.mean(x, axis=-1, keepdims=True)
    var = jnp.mean(x * x, axis=-1, keepdims=True) - mu * mu
    y = (x - mu) * lax.rsqrt(var + LN_EPS) * ln1_g + ln1_b

    qkv = jnp.dot(y, qkv_w, preferred_element_type=jnp.float32)     # (BN, 3C)
    q = qkv[:, 0:C]            # temperature * head_dim^-0.5 already folded in
    kv = qkv[:, C:3 * C]       # (BN, 2C) = [K | V]

    # Replicate [K|V] rows to all (batch, head, key) slots with one MXU
    # matmul, then zero cross-head features with a precomputed mask.
    kv_rep = jnp.dot(rep_mat, kv,
                     preferred_element_type=jnp.float32) * head_mask  # (NJ, 2C)
    k_t = kv_rep[:, 0:C]        # (NJ, C)
    v_b = kv_rep[:, C:2 * C]    # (NJ, C)

    # Scores for ALL (batch, head) pairs at once: A.B^T form on the MXU.
    s = lax.dot_general(q, k_t, (((1,), (1,)), ((), ())),
                        preferred_element_type=jnp.float32)           # (BN, NJ)

    # Per-(batch,head) softmax.  Row-global max is used for stabilization —
    # valid for this weight scale; denominator mask groups by head only so
    # cross-batch columns see a strictly positive denominator (no 0*inf).
    s = s - jnp.max(s, axis=-1, keepdims=True)
    p = jnp.exp(s) * batch_mask                                        # (BN, NJ)
    denom = jnp.dot(p, denom_mask, preferred_element_type=jnp.float32)
    p = p * pl.reciprocal(denom, approx=False)

    # P @ V lands directly in head-concatenated (BN, C) layout.
    attn = jnp.dot(p, v_b, preferred_element_type=jnp.float32)        # (BN, C)
    attn = jnp.dot(attn, proj_w, preferred_element_type=jnp.float32) + proj_b
    x1 = x + attn

    # ---------------- MLP branch: x + mlp(norm2(x)) ----------------
    mu2 = jnp.mean(x1, axis=-1, keepdims=True)
    var2 = jnp.mean(x1 * x1, axis=-1, keepdims=True) - mu2 * mu2
    y2 = (x1 - mu2) * lax.rsqrt(var2 + LN_EPS) * ln2_g + ln2_b

    h = jnp.dot(y2, w1, preferred_element_type=jnp.float32) + b1       # (BN, H)
    h = _gelu_exact(h)
    mlp = lax.dot_general(h, w2t, (((1,), (1,)), ((), ())),
                          preferred_element_type=jnp.float32) + b2     # (BN, C)

    # TODO(synk): output last dim is C=32 (<128) so the final store is lane-
    # masked; a lane-dense repack is not worth it at 2 KiB.
    o_ref[...] = (x1 + mlp).astype(o_ref.dtype)


# ---------------------------------------------------------------------------
# Parameter packing (done once, outside the per-call path)
# ---------------------------------------------------------------------------
def _build_mask_slab():
    j = np.arange(NJ)
    b_j = j // (NUM_HEADS * SEQ)
    h_j = (j // SEQ) % NUM_HEADS
    m_j = j % SEQ

    c = np.arange(2 * EMBED_DIM)
    head_mask = ((c[None, :] % EMBED_DIM) // HEAD_DIM == h_j[:, None])
    denom_mask = h_j[:, None] == h_j[None, :]
    rep_mat = np.arange(BN)[None, :] == (b_j * SEQ + m_j)[:, None]
    batch_mask = (np.arange(BN)[:, None] // SEQ) == b_j[None, :]

    slab = np.zeros((NJ, MSK_SLAB_COLS), np.float32)
    slab[:, _MH2_OFF:_MH2_OFF + 2 * EMBED_DIM] = head_mask
    slab[:, _D_OFF:_D_OFF + NJ] = denom_mask
    slab[:, _R_OFF:_R_OFF + BN] = rep_mat
    slab[0:BN, _BM_OFF:_BM_OFF + NJ] = batch_mask
    return jnp.asarray(slab)


def pack_params(params):
    (ln1_g, ln1_b, qkv_w, proj_w, proj_b, temp,
     ln2_g, ln2_b, w1, b1, w2, b2) = params
    C = EMBED_DIM

    # Fold (head_dim^-0.5 * temperature) into the Q columns of the QKV weight
    # (valid because the QKV projection has no bias): (s*Q) K^T == s * (Q K^T).
    scale = (HEAD_DIM ** -0.5) * temp[0, 0]
    qkv_w_scaled = qkv_w.at[:, :C].multiply(scale)

    w_slab = jnp.concatenate([qkv_w_scaled, proj_w, w1, w2.T], axis=1)  # (32, 384)

    vec = jnp.zeros((8, 128), jnp.float32)
    vec = vec.at[_ROW_LN1G, :C].set(ln1_g[0])
    vec = vec.at[_ROW_LN1B, :C].set(ln1_b[0])
    vec = vec.at[_ROW_LN2G, :C].set(ln2_g[0])
    vec = vec.at[_ROW_LN2B, :C].set(ln2_b[0])
    vec = vec.at[_ROW_PRJB, :C].set(proj_b[0])
    vec = vec.at[_ROW_B2, :C].set(b2[0])
    vec = vec.at[_ROW_B1, :MLP_HIDDEN].set(b1[0])

    return vec, w_slab, _build_mask_slab()


# ---------------------------------------------------------------------------
# Wrapper
# ---------------------------------------------------------------------------
def nkat_transformer_block(x, packed):
    vec_slab, w_slab, msk_slab = packed
    B, N, C = x.shape
    x2d = x.reshape(B * N, C)

    vmem = pl.BlockSpec(memory_space=pltpu.MemorySpace.VMEM)
    out2d = pl.pallas_call(
        nkat_block_kernel,
        out_shape=jax.ShapeDtypeStruct((B * N, C), x.dtype),
        in_specs=[vmem, vmem, vmem, vmem],
        out_specs=vmem,
    )(x2d, vec_slab, w_slab, msk_slab)
    return out2d.reshape(B, N, C)


# ---------------------------------------------------------------------------
# Pure-JAX reference (mirrors the PyTorch forward in eval mode)
# ---------------------------------------------------------------------------
def _layernorm_ref(x, gamma, beta, eps=LN_EPS):
    mean = jnp.mean(x, axis=-1, keepdims=True)
    var = jnp.mean((x - mean) ** 2, axis=-1, keepdims=True)
    return (x - mean) * lax.rsqrt(var + eps) * gamma + beta


def reference_forward(x, params):
    (ln1_g, ln1_b, qkv_w, proj_w, proj_b, temp,
     ln2_g, ln2_b, w1, b1, w2, b2) = params
    B, N, C = x.shape

    y = _layernorm_ref(x, ln1_g[0], ln1_b[0])
    qkv = y @ qkv_w                                        # (B, N, 3C)
    qkv = qkv.reshape(B, N, 3, NUM_HEADS, HEAD_DIM).transpose(2, 0, 3, 1, 4)
    q, k, v = qkv[0], qkv[1], qkv[2]                       # (B, nh, N, hd)
    scale = (HEAD_DIM ** (-0.5)) * temp[0, 0]
    attn = jnp.einsum("bhqd,bhkd->bhqk", q, k) * scale
    attn = jax.nn.softmax(attn, axis=-1)
    out = jnp.einsum("bhqk,bhkd->bhqd", attn, v)           # (B, nh, N, hd)
    out = out.transpose(0, 2, 1, 3).reshape(B, N, C)
    out = out @ proj_w + proj_b[0]
    x1 = x + out

    y2 = _layernorm_ref(x1, ln2_g[0], ln2_b[0])
    h = _gelu_exact(y2 @ w1 + b1[0])
    return x1 + (h @ w2 + b2[0])


# ---------------------------------------------------------------------------
# Deterministic parameter init + run
# ---------------------------------------------------------------------------
def make_params(key):
    ks = jax.random.split(key, 8)
    scale = 0.02
    ln1_g = jnp.ones((1, EMBED_DIM), jnp.float32)
    ln1_b = jnp.zeros((1, EMBED_DIM), jnp.float32)
    qkv_w = scale * jax.random.normal(ks[0], (EMBED_DIM, 3 * EMBED_DIM), jnp.float32)
    proj_w = scale * jax.random.normal(ks[1], (EMBED_DIM, EMBED_DIM), jnp.float32)
    proj_b = scale * jax.random.normal(ks[2], (1, EMBED_DIM), jnp.float32)
    temp = jnp.full((1, 1), TEMPERATURE, jnp.float32)
    ln2_g = jnp.ones((1, EMBED_DIM), jnp.float32)
    ln2_b = jnp.zeros((1, EMBED_DIM), jnp.float32)
    w1 = scale * jax.random.normal(ks[3], (EMBED_DIM, MLP_HIDDEN), jnp.float32)
    b1 = scale * jax.random.normal(ks[4], (1, MLP_HIDDEN), jnp.float32)
    w2 = scale * jax.random.normal(ks[5], (MLP_HIDDEN, EMBED_DIM), jnp.float32)
    b2 = scale * jax.random.normal(ks[6], (1, EMBED_DIM), jnp.float32)
    return (ln1_g, ln1_b, qkv_w, proj_w, proj_b, temp,
            ln2_g, ln2_b, w1, b1, w2, b2)


if __name__ == "__main__":
    key = jax.random.PRNGKey(0)
    k_x, k_p = jax.random.split(key)
    x = jax.random.normal(k_x, (BATCH, SEQ, EMBED_DIM), jnp.float32)
    params = make_params(k_p)

    packed = pack_params(params)                 # one-time weight/mask prep
    out = jax.block_until_ready(nkat_transformer_block(x, packed))

    ref = reference_forward(x, params)
    assert out.shape == (BATCH, SEQ, EMBED_DIM)
    assert jnp.allclose(out, ref, atol=1e-4, rtol=1e-4), "mismatch vs reference"

    print("KERNEL_OK")
</pallas_src>

<mosaic_0001>
module attributes {stable_mosaic.version = 11 : i64} {
  func.func @nkat_block_kernel(%arg0: memref<16x32xf32, #tpu.memory_space<vmem>>, %arg1: memref<8x128xf32, #tpu.memory_space<vmem>>, %arg2: memref<32x384xf32, #tpu.memory_space<vmem>>, %arg3: memref<64x256xf32, #tpu.memory_space<vmem>>, %arg4: memref<16x32xf32, #tpu.memory_space<vmem>>) attributes {dimension_semantics = [], scalar_prefetch = 0 : i64, scratch_operands = 0 : i64, tpu.core_type = #tpu.core_type<tc>} {
    %c0 = arith.constant 0 : index
    %c0_0 = arith.constant 0 : index
    %0 = vector.load %arg0[%c0, %c0_0] : memref<16x32xf32, #tpu.memory_space<vmem>>, vector<16x32xf32>
    %c0_1 = arith.constant 0 : index
    %c0_2 = arith.constant 0 : index
    %1 = vector.load %arg1[%c0_1, %c0_2] : memref<8x128xf32, #tpu.memory_space<vmem>>, vector<1x32xf32>
    %c1 = arith.constant 1 : index
    %c0_3 = arith.constant 0 : index
    %2 = vector.load %arg1[%c1, %c0_3] : memref<8x128xf32, #tpu.memory_space<vmem>>, vector<1x32xf32>
    %c2 = arith.constant 2 : index
    %c0_4 = arith.constant 0 : index
    %3 = vector.load %arg1[%c2, %c0_4] : memref<8x128xf32, #tpu.memory_space<vmem>>, vector<1x32xf32>
    %c3 = arith.constant 3 : index
    %c0_5 = arith.constant 0 : index
    %4 = vector.load %arg1[%c3, %c0_5] : memref<8x128xf32, #tpu.memory_space<vmem>>, vector<1x32xf32>
    %c4 = arith.constant 4 : index
    %c0_6 = arith.constant 0 : index
    %5 = vector.load %arg1[%c4, %c0_6] : memref<8x128xf32, #tpu.memory_space<vmem>>, vector<1x32xf32>
    %c5 = arith.constant 5 : index
    %c0_7 = arith.constant 0 : index
    %6 = vector.load %arg1[%c5, %c0_7] : memref<8x128xf32, #tpu.memory_space<vmem>>, vector<1x32xf32>
    %c6 = arith.constant 6 : index
    %c0_8 = arith.constant 0 : index
    %7 = vector.load %arg1[%c6, %c0_8] : memref<8x128xf32, #tpu.memory_space<vmem>>, vector<1x128xf32>
    %c0_9 = arith.constant 0 : index
    %c0_10 = arith.constant 0 : index
    %8 = vector.load %arg2[%c0_9, %c0_10] : memref<32x384xf32, #tpu.memory_space<vmem>>, vector<32x96xf32>
    %c0_11 = arith.constant 0 : index
    %c96 = arith.constant 96 : index
    %9 = vector.load %arg2[%c0_11, %c96] : memref<32x384xf32, #tpu.memory_space<vmem>>, vector<32x32xf32>
    %c0_12 = arith.constant 0 : index
    %c128 = arith.constant 128 : index
    %10 = vector.load %arg2[%c0_12, %c128] : memref<32x384xf32, #tpu.memory_space<vmem>>, vector<32x128xf32>
    %c0_13 = arith.constant 0 : index
    %c256 = arith.constant 256 : index
    %11 = vector.load %arg2[%c0_13, %c256] : memref<32x384xf32, #tpu.memory_space<vmem>>, vector<32x128xf32>
    %c0_14 = arith.constant 0 : index
    %c0_15 = arith.constant 0 : index
    %12 = vector.load %arg3[%c0_14, %c0_15] : memref<64x256xf32, #tpu.memory_space<vmem>>, vector<64x64xf32>
    %c0_16 = arith.constant 0 : index
    %c64 = arith.constant 64 : index
    %13 = vector.load %arg3[%c0_16, %c64] : memref<64x256xf32, #tpu.memory_space<vmem>>, vector<64x64xf32>
    %c0_17 = arith.constant 0 : index
    %c128_18 = arith.constant 128 : index
    %14 = vector.load %arg3[%c0_17, %c128_18] : memref<64x256xf32, #tpu.memory_space<vmem>>, vector<64x16xf32>
    %c0_19 = arith.constant 0 : index
    %c192 = arith.constant 192 : index
    %15 = vector.load %arg3[%c0_19, %c192] : memref<64x256xf32, #tpu.memory_space<vmem>>, vector<16x64xf32>
    %cst = arith.constant dense<0.000000e+00> : vector<16xf32>
    %16 = vector.multi_reduction <add>, %0, %cst [1] : vector<16x32xf32> to vector<16xf32>
    %17 = vector.shape_cast %16 : vector<16xf32> to vector<16x1xf32>
    %cst_20 = arith.constant 3.200000e+01 : f32
    %18 = vector.broadcast %cst_20 : f32 to vector<16x1xf32>
    %19 = arith.divf %17, %18 : vector<16x1xf32>
    %20 = arith.mulf %0, %0 : vector<16x32xf32>
    %cst_21 = arith.constant dense<0.000000e+00> : vector<16xf32>
    %21 = vector.multi_reduction <add>, %20, %cst_21 [1] : vector<16x32xf32> to vector<16xf32>
    %22 = vector.shape_cast %21 : vector<16xf32> to vector<16x1xf32>
    %cst_22 = arith.constant 3.200000e+01 : f32
    %23 = vector.broadcast %cst_22 : f32 to vector<16x1xf32>
    %24 = arith.divf %22, %23 : vector<16x1xf32>
    %25 = arith.mulf %19, %19 : vector<16x1xf32>
    %26 = arith.subf %24, %25 : vector<16x1xf32>
    %27 = vector.broadcast %19 : vector<16x1xf32> to vector<16x32xf32>
    %28 = arith.subf %0, %27 : vector<16x32xf32>
    %cst_23 = arith.constant 9.99999974E-6 : f32
    %29 = vector.broadcast %cst_23 : f32 to vector<16x1xf32>
    %30 = arith.addf %26, %29 : vector<16x1xf32>
    %31 = math.rsqrt %30 : vector<16x1xf32>
    %32 = vector.broadcast %31 : vector<16x1xf32> to vector<16x32xf32>
    %33 = arith.mulf %28, %32 : vector<16x32xf32>
    %34 = vector.broadcast %1 : vector<1x32xf32> to vector<16x32xf32>
    %35 = arith.mulf %33, %34 : vector<16x32xf32>
    %36 = vector.broadcast %2 : vector<1x32xf32> to vector<16x32xf32>
    %37 = arith.addf %35, %36 : vector<16x32xf32>
    %cst_24 = arith.constant dense<0.000000e+00> : vector<16x96xf32>
    %38 = tpu.matmul %37, %8, %cst_24 {dimension_numbers = #tpu.dot_dimension_numbers<[1], [0], [0], [1], [0, 0, 1, 1], [], []>} : vector<16x32xf32>, vector<32x96xf32>, vector<16x96xf32> -> vector<16x96xf32>
    %39 = vector.extract_strided_slice %38 {offsets = [0, 0], sizes = [16, 32], strides = [1, 1]} : vector<16x96xf32> to vector<16x32xf32>
    %40 = vector.extract_strided_slice %38 {offsets = [0, 32], sizes = [16, 64], strides = [1, 1]} : vector<16x96xf32> to vector<16x64xf32>
    %cst_25 = arith.constant dense<0.000000e+00> : vector<64x64xf32>
    %41 = tpu.matmul %14, %40, %cst_25 {dimension_numbers = #tpu.dot_dimension_numbers<[1], [0], [0], [1], [0, 0, 1, 1], [], []>} : vector<64x16xf32>, vector<16x64xf32>, vector<64x64xf32> -> vector<64x64xf32>
    %42 = arith.mulf %41, %12 : vector<64x64xf32>
    %43 = vector.extract_strided_slice %42 {offsets = [0, 0], sizes = [64, 32], strides = [1, 1]} : vector<64x64xf32> to vector<64x32xf32>
    %44 = vector.extract_strided_slice %42 {offsets = [0, 32], sizes = [64, 32], strides = [1, 1]} : vector<64x64xf32> to vector<64x32xf32>
    %cst_26 = arith.constant dense<0.000000e+00> : vector<16x64xf32>
    %45 = tpu.matmul %39, %43, %cst_26 {dimension_numbers = #tpu.dot_dimension_numbers<[1], [1], [0], [0], [0, 0, 1, 0], [], []>} : vector<16x32xf32>, vector<64x32xf32>, vector<16x64xf32> -> vector<16x64xf32>
    %cst_27 = arith.constant dense<0xFF800000> : vector<16xf32>
    %46 = vector.multi_reduction <maximumf>, %45, %cst_27 [1] : vector<16x64xf32> to vector<16xf32>
    %47 = vector.shape_cast %46 : vector<16xf32> to vector<16x1xf32>
    %48 = vector.broadcast %47 : vector<16x1xf32> to vector<16x64xf32>
    %49 = arith.subf %45, %48 : vector<16x64xf32>
    %50 = math.exp %49 : vector<16x64xf32>
    %51 = arith.mulf %50, %15 : vector<16x64xf32>
    %cst_28 = arith.constant dense<0.000000e+00> : vector<16x64xf32>
    %52 = tpu.matmul %51, %13, %cst_28 {dimension_numbers = #tpu.dot_dimension_numbers<[1], [0], [0], [1], [0, 0, 1, 1], [], []>} : vector<16x64xf32>, vector<64x64xf32>, vector<16x64xf32> -> vector<16x64xf32>
    %53 = tpu.reciprocal %52 : vector<16x64xf32> -> vector<16x64xf32>
    %54 = arith.mulf %51, %53 : vector<16x64xf32>
    %cst_29 = arith.constant dense<0.000000e+00> : vector<16x32xf32>
    %55 = tpu.matmul %54, %44, %cst_29 {dimension_numbers = #tpu.dot_dimension_numbers<[1], [0], [0], [1], [0, 0, 1, 1], [], []>} : vector<16x64xf32>, vector<64x32xf32>, vector<16x32xf32> -> vector<16x32xf32>
    %cst_30 = arith.constant dense<0.000000e+00> : vector<16x32xf32>
    %56 = tpu.matmul %55, %9, %cst_30 {dimension_numbers = #tpu.dot_dimension_numbers<[1], [0], [0], [1], [0, 0, 1, 1], [], []>} : vector<16x32xf32>, vector<32x32xf32>, vector<16x32xf32> -> vector<16x32xf32>
    %57 = vector.broadcast %5 : vector<1x32xf32> to vector<16x32xf32>
    %58 = arith.addf %56, %57 : vector<16x32xf32>
    %59 = arith.addf %0, %58 : vector<16x32xf32>
    %cst_31 = arith.constant dense<0.000000e+00> : vector<16xf32>
    %60 = vector.multi_reduction <add>, %59, %cst_31 [1] : vector<16x32xf32> to vector<16xf32>
    %61 = vector.shape_cast %60 : vector<16xf32> to vector<16x1xf32>
    %cst_32 = arith.constant 3.200000e+01 : f32
    %62 = vector.broadcast %cst_32 : f32 to vector<16x1xf32>
    %63 = arith.divf %61, %62 : vector<16x1xf32>
    %64 = arith.mulf %59, %59 : vector<16x32xf32>
    %cst_33 = arith.constant dense<0.000000e+00> : vector<16xf32>
    %65 = vector.multi_reduction <add>, %64, %cst_33 [1] : vector<16x32xf32> to vector<16xf32>
    %66 = vector.shape_cast %65 : vector<16xf32> to vector<16x1xf32>
    %cst_34 = arith.constant 3.200000e+01 : f32
    %67 = vector.broadcast %cst_34 : f32 to vector<16x1xf32>
    %68 = arith.divf %66, %67 : vector<16x1xf32>
    %69 = arith.mulf %63, %63 : vector<16x1xf32>
    %70 = arith.subf %68, %69 : vector<16x1xf32>
    %71 = vector.broadcast %63 : vector<16x1xf32> to vector<16x32xf32>
    %72 = arith.subf %59, %71 : vector<16x32xf32>
    %cst_35 = arith.constant 9.99999974E-6 : f32
    %73 = vector.broadcast %cst_35 : f32 to vector<16x1xf32>
    %74 = arith.addf %70, %73 : vector<16x1xf32>
    %75 = math.rsqrt %74 : vector<16x1xf32>
    %76 = vector.broadcast %75 : vector<16x1xf32> to vector<16x32xf32>
    %77 = arith.mulf %72, %76 : vector<16x32xf32>
    %78 = vector.broadcast %3 : vector<1x32xf32> to vector<16x32xf32>
    %79 = arith.mulf %77, %78 : vector<16x32xf32>
    %80 = vector.broadcast %4 : vector<1x32xf32> to vector<16x32xf32>
    %81 = arith.addf %79, %80 : vector<16x32xf32>
    %cst_36 = arith.constant dense<0.000000e+00> : vector<16x128xf32>
    %82 = tpu.matmul %81, %10, %cst_36 {dimension_numbers = #tpu.dot_dimension_numbers<[1], [0], [0], [1], [0, 0, 1, 1], [], []>} : vector<16x32xf32>, vector<32x128xf32>, vector<16x128xf32> -> vector<16x128xf32>
    %83 = vector.broadcast %7 : vector<1x128xf32> to vector<16x128xf32>
    %84 = arith.addf %82, %83 : vector<16x128xf32>
    %cst_37 = arith.constant 5.000000e-01 : f32
    %85 = vector.broadcast %cst_37 : f32 to vector<16x128xf32>
    %86 = arith.mulf %85, %84 : vector<16x128xf32>
    %cst_38 = arith.constant 0.707106769 : f32
    %87 = vector.broadcast %cst_38 : f32 to vector<16x128xf32>
    %88 = arith.mulf %84, %87 : vector<16x128xf32>
    %89 = math.erf %88 : vector<16x128xf32>
    %cst_39 = arith.constant 1.000000e+00 : f32
    %90 = vector.broadcast %cst_39 : f32 to vector<16x128xf32>
    %91 = arith.addf %90, %89 : vector<16x128xf32>
    %92 = arith.mulf %86, %91 : vector<16x128xf32>
    %cst_40 = arith.constant dense<0.000000e+00> : vector<16x32xf32>
    %93 = tpu.matmul %92, %11, %cst_40 {dimension_numbers = #tpu.dot_dimension_numbers<[1], [1], [0], [0], [0, 0, 1, 0], [], []>} : vector<16x128xf32>, vector<32x128xf32>, vector<16x32xf32> -> vector<16x32xf32>
    %94 = vector.broadcast %6 : vector<1x32xf32> to vector<16x32xf32>
    %95 = arith.addf %93, %94 : vector<16x32xf32>
    %96 = arith.addf %59, %95 : vector<16x32xf32>
    %c0_41 = arith.constant 0 : index
    %c0_42 = arith.constant 0 : index
    %97 = vector.load %arg4[%c0_41, %c0_42] : memref<16x32xf32, #tpu.memory_space<vmem>>, vector<16x32xf32>
    tpu.vector_store %arg4[%c0_41, %c0_42], %96 {strides = array<i32>} : memref<16x32xf32, #tpu.memory_space<vmem>>, vector<16x32xf32>,
    return
  }
}

</mosaic_0001>

<bundles_post_ra>
// kernel: tpu_custom_call.1
= control target key start
LH: loop header
LB: loop body
LE: loop exit
PB: predicated region body
PF: predicated region fallthrough
CT: control target
= control target key end

     0   :  { %9 = vsyncpa [#allocation3], 0  ;;  %s1613_s0 = inlined_call_operand.hbm [shape: f32[16,32], index: 0, kind: input, shape index: {}]   ;;  %s1614_s1 = inlined_call_operand.hbm [shape: f32[8,128], index: 1, kind: input, shape index: {}]   ;;  %s1615_s2 = inlined_call_operand.hbm [shape: f32[32,384], index: 2, kind: input, shape index: {}]   ;;  %s1616_s3 = inlined_call_operand.hbm [shape: f32[64,256], index: 3, kind: input, shape index: {}]   ;;  %s1617_s4 = inlined_call_operand.hbm [shape: f32[16,32], index: 4, kind: output, shape index: {}]  }
   0x1   :  { %10 = vsyncpa [#allocation6], 0 }
   0x2   :  { %11 = vsyncpa [#allocation9], 0 }
   0x3   :  { %12 = vsyncpa [#allocation4], 0  ;;  %s1429_s15 = smov [#allocation5]   ;;  %s1430_s17 = smov [#allocation2]  }
   0x4   :  { %s31_s16 = sshll.u32 %s1429_s15, 4  ;;  %s18_s18 = sshll.u32 %s1430_s17, 4  ;;  %s32_s16 = int_to_ptr.vmem [resolvable:$true] %s31_s16  ;;  %s19_s18 = int_to_ptr.vmem [resolvable:$true] %s18_s18 }
   0x5   :  { %s1329_s19 = scalar_lea.vmem %s32_s16, 128  ;;  %p1334_p1 = scmp.lt.s32.totalorder %s32_s16, %s32_s16 }
   0x6   :  { %p1330_p0 = scmp.ne.s32.totalorder %s32_s16, %s1329_s19  ;;  %p1335_p2 = scmp.lt.s32.totalorder %s1329_s19, %s1329_s19 }
   0x8   :  { %p1336_p3 = por %p1335_p2, %p1334_p1 }
   0xa   :  { %p1337_p4 = pnand %p1336_p3, %p1330_p0 }
   0xc   :  { %1340 = shalt.err (!%p1337_p4)
}
   0xd   :  { %34 = dma.hbm_to_vmem [thread:$0]  %s1614_s1, 128, %s32_s16, [#allocation6]  }
   0xe   :  { %s1349_s22 = scalar_lea.vmem %s19_s18, 256  ;;  %p1354_p6 = scmp.lt.s32.totalorder %s19_s18, %s19_s18 }
   0xf   :  { %p1350_p5 = scmp.ne.s32.totalorder %s19_s18, %s1349_s22  ;;  %p1355_p7 = scmp.lt.s32.totalorder %s1349_s22, %s1349_s22 }
  0x11   :  { %p1356_p8 = por %p1355_p7, %p1354_p6 }
  0x13   :  { %p1357_p9 = pnand %p1356_p8, %p1350_p5 }
  0x15   :  { %1360 = shalt.err (!%p1357_p9)
}
  0x16   :  { %s1431_s23 = smov 128   ;;  %s1432_s24 = smov 8  }
  0x17   :  { %24 = dma.hbm_to_vmem [thread:$0]  %s1613_s0, 256, %s19_s18, [#allocation3], %s1431_s23, %s1431_s23, %s1432_s24  }
  0x18   :  { %s1433_s27 = smov [#allocation7]  }
  0x19   :  { %s40_s28 = sshll.u32 %s1433_s27, 4  ;;  %s41_s28 = int_to_ptr.vmem [resolvable:$true] %s40_s28 }
  0x1a   :  { %s1369_s1 = scalar_lea.vmem %s41_s28, 1536  ;;  %p1374_p11 = scmp.lt.s32.totalorder %s41_s28, %s41_s28 }
  0x1b   :  { %p1370_p10 = scmp.ne.s32.totalorder %s41_s28, %s1369_s1  ;;  %p1375_p12 = scmp.lt.s32.totalorder %s1369_s1, %s1369_s1 }
  0x1d   :  { %p1376_p13 = por %p1375_p12, %p1374_p11 }
  0x1f   :  { %p1377_p0 = pnand %p1376_p13, %p1370_p10 }
  0x21   :  { %1380 = shalt.err (!%p1377_p0)
}
  0x22   :  { %s1434_s29 = smov 384   ;;  %s1435_s30 = smov 24  }
  0x23   :  { %46 = dma.hbm_to_vmem [thread:$0]  %s1615_s2, 1536, %s41_s28, [#allocation6], %s1434_s29, %s1434_s29, %s1435_s30  }
  0x24   :  { %s1436_s7 = smov [#allocation8]  }
  0x25   :  { %s52_s8 = sshll.u32 %s1436_s7, 4  ;;  %s53_s8 = int_to_ptr.vmem [resolvable:$true] %s52_s8 }
  0x26   :  { %s1389_s0 = scalar_lea.vmem %s53_s8, 2048  ;;  %p1394_p2 = scmp.lt.s32.totalorder %s53_s8, %s53_s8 }
  0x27   :  { %p1390_p1 = scmp.ne.s32.totalorder %s53_s8, %s1389_s0  ;;  %p1395_p3 = scmp.lt.s32.totalorder %s1389_s0, %s1389_s0 }
  0x29   :  { %p1396_p4 = por %p1395_p3, %p1394_p2 }
  0x2b   :  { %p1397_p5 = pnand %p1396_p4, %p1390_p1 }
  0x2d   :  { %1400 = shalt.err (!%p1397_p5)
}
  0x2e   :  { %s1437_s9 = smov 256   ;;  %s1438_s10 = smov 16  }
  0x2f   :  { %58 = dma.hbm_to_vmem [thread:$0]  %s1616_s3, 2048, %s53_s8, [#allocation9], %s1437_s9, %s1437_s9, %s1438_s10  }
  0x30   :  { %1421 = dma.done.wait [#allocation3], 256  }
  0x31   :  { %1422 = vsyncadd [#allocation3], 4294967040 }
  0x32   :  { %1423 = dma.done.wait [#allocation6], 1664  }
  0x33   :  { %1424 = vsyncadd [#allocation6], 4294965632 }
  0x34   :  { %1425 = dma.done.wait [#allocation9], 2048  }
  0x35   :  { %1426 = vsyncadd [#allocation9], 4294965248  ;;  %vm110_vm0 = vcmask 261120   ;;  %v1483_v0 = vld [vmem:[#allocation2] sm:$0xff]  ;;  %v1485_v1 = vld [vmem:[#allocation2 + $0x8] sm:$0xff]  ;;  %vm243_vm1 = vcmask 130048  }
  0x36   :  { %v111_v2 = vsel %vm110_vm0, %v1483_v0, 0.0  ;;  %v120_v3 = vmul.f32 %v1483_v0, %v1483_v0  ;;  %v121_v4 = vmul.f32 %v1485_v1, %v1485_v1  ;;  %v114_v6 = vsel %vm110_vm0, %v1485_v1, 0.0  ;;  %v1497_v8 = vld [vmem:[#allocation7 + $0x48] sm:$0xff]  ;;  %v1499_v9 = vld [vmem:[#allocation7 + $0x30] sm:$0xff]  ;;  %v1503_v10 = vld [vmem:[#allocation7 + $0x18] sm:$0xff]  ;;  %s1439_s2 = smov 96  }
  0x37   :  { %112 = vadd.xlane.f32.xlu0 %v111_v2  ;;  %1170 = vmatprep.subr.mxu0 %v1497_v8  ;;  %v1509_v11 = vld [vmem:[#allocation7] sm:$0xff]  ;;  %v1071_v28 = vld [vmem:[#allocation5] ss:$0 sm:$0xff]  ;;  %v1072_v30 = vld [vmem:[#allocation5 + $0x1] ss:$0 sm:$0xff]  ;;  %s1440_s3 = smov 64  }
  0x38   :  { %v122_v5 = vsel %vm110_vm0, %v120_v3, 0.0  ;;  %v125_v7 = vsel %vm110_vm0, %v121_v4, 0.0  ;;  %1171 = vmatpush3.msra.mxu0 %v1497_v8  ;;  %v100_v38 = vld [vmem:[#allocation8 + $0x8] sm:$0xff]  ;;  %v1524_v43 = vld [vmem:[#allocation8 + $0x18] sm:$0xff]  ;;  %v99_v50 = vld [vmem:[#allocation8 + $0x70] sm:$0xff]  ;;  %vm484_vm2 = vcmask 523264  }
  0x39   :  { %123 = vadd.xlane.f32.xlu1 %v122_v5  ;;  %1172 = vmatprep.subr.mxu0 %v1499_v9  ;;  %v102_v44 = vld [vmem:[#allocation8 + $0x28] sm:$0xff]  ;;  %v103_v45 = vld [vmem:[#allocation8 + $0x38] sm:$0xff]  ;;  %v98_v51 = vld [vmem:[#allocation8 + $0x60] sm:$0xff]  ;;  %s1441_s13 = smov 32   ;;  %s1442_s14 = smov [#allocation10]  }
  0x3a   :  { %1173 = vmatpush3.msra.mxu0 %v1499_v9  ;;  %v104_v46 = vld [vmem:[#allocation8 + $0x48] sm:$0xff]  ;;  %v105_v47 = vld [vmem:[#allocation8 + $0x58] sm:$0xff]  ;;  %v95_v52 = vld [vmem:[#allocation8 + $0x30] sm:$0xff]  ;;  %s1057_s15 = sshll.u32 %s1442_s14, 4  ;;  %s1058_s15 = int_to_ptr.vmem [resolvable:$true] %s1057_s15 }
  0x3b   :  { %115 = vadd.xlane.f32.xlu0 %v114_v6  ;;  %1174 = vmatprep.subr.mxu0 %v1503_v10  ;;  %v106_v48 = vld [vmem:[#allocation8 + $0x68] sm:$0xff]  ;;  %v107_v49 = vld [vmem:[#allocation8 + $0x78] sm:$0xff]  ;;  %v97_v53 = vld [vmem:[#allocation8 + $0x50] sm:$0xff]  ;;  %s1401_s16 = scalar_lea.vmem %s1058_s15, 256  ;;  %p1406_p7 = scmp.lt.s32.totalorder %s1058_s15, %s1058_s15 }
  0x3c   :  { %1175 = vmatpush3.msra.mxu0 %v1503_v10  ;;  %v93_v54 = vld [vmem:[#allocation8 + $0x10] sm:$0xff]  ;;  %v96_v55 = vld [vmem:[#allocation8 + $0x40] sm:$0xff]  ;;  %p1402_p6 = scmp.ne.s32.totalorder %s1058_s15, %s1401_s16  ;;  %p1407_p8 = scmp.lt.s32.totalorder %s1401_s16, %s1401_s16 }
  0x3d   :  { %126 = vadd.xlane.f32.xlu1 %v125_v7  ;;  %1176 = vmatprep.subr.mxu0 %v1509_v11  ;;  %v94_v56 = vld [vmem:[#allocation8 + $0x20] sm:$0xff] }
  0x3e   :  { %1177 = vmatpush3.msra.mxu0 %v1509_v11  ;;  %p1408_p9 = por %p1407_p8, %p1406_p7 }
  0x40   :  { %p1409_p10 = pnand %p1408_p9, %p1402_p6 }
  0xc0   :  { %v113_v12 = vpop.xlane.xlu0 %112 }
  0xc1   :  { %v118_v13 = vmul.f32 0.03125, %v113_v12 }
  0xc2   :  { %v124_v14 = vpop.xlane.xlu1 %123 }
  0xc3   :  { %v130_v15 = vmul.f32 %v118_v13, %v118_v13  ;;  %v128_v16 = vmul.f32 0.03125, %v124_v14  ;;  %v134_v26 = vsub.f32 %v1483_v0, %v118_v13  ;;  %v92_v14 = vld [vmem:[#allocation8] sm:$0xff] }
  0xc4   :  { %v116_v17 = vpop.xlane.xlu0 %115 }
  0xc5   :  { %v132_v18 = vsub.f32 %v128_v16, %v130_v15  ;;  %v119_v19 = vmul.f32 0.03125, %v116_v17 }
  0xc6   :  { %v127_v20 = vpop.xlane.xlu1 %126 }
  0xc7   :  { %v136_v21 = vadd.f32 1e-05, %v132_v18  ;;  %v131_v22 = vmul.f32 %v119_v19, %v119_v19  ;;  %v129_v23 = vmul.f32 0.03125, %v127_v20  ;;  %v135_v31 = vsub.f32 %v1485_v1, %v119_v19 }
  0xc9   :  { %1301 = vrsqrt.f32 %v136_v21  ;;  %v133_v24 = vsub.f32 %v129_v23, %v131_v22 }
  0xcb   :  { %v137_v25 = vadd.f32 1e-05, %v133_v24 }
  0xcd   :  { %1303 = vrsqrt.f32 %v137_v25 }
  0xd6   :  { %v1302_v27 = vpop.eup %1301 }
  0xd7   :  { %v140_v29 = vmul.f32 %v1302_v27, %v134_v26 }
  0xd9   :  { %v146_v32 = vmul.f32 %v1071_v28, %v140_v29 }
  0xda   :  { %v1304_v33 = vpop.eup %1303 }
  0xdb   :  { %v141_v34 = vmul.f32 %v1304_v33, %v135_v31  ;;  %v152_v35 = vadd.f32 %v1072_v30, %v146_v32 }
  0xdd   :  { %v147_v36 = vmul.f32 %v1071_v28, %v141_v34  ;;  %1178 = vmatprep.mubr.msk.f32.mxu0 %vm110_vm0, %v152_v35 }
  0xdf   :  { %v153_v37 = vadd.f32 %v1072_v30, %v147_v36 }
  0xe1   :  { %1179 = vmatmul.mubr.msk.f32.vlgmr.msra.gmra.mxu0 %vm110_vm0, %v153_v37 }
  0xe2   :  { %1185 = vmatprep.mubr.msk.f32.mxu0 %vm243_vm1, %v100_v38 }
 0x1a1   :  { %v1518_v39 = vpop.f32.mrf.mxu0 }
 0x1a2   :  { %239 = vrot.lane.b32.xlu0 %v1518_v39, %s1439_s2 }
 0x1a3   :  { %v226_v40 = vpop.f32.mrf.mxu0 }
 0x1a4   :  { %237 = vrot.lane.b32.xlu1 %v226_v40, %s1439_s2  ;;  %1213 = vmatprep.mubr.msk.f32.mxu1 %vm110_vm0, %v226_v40 }
 0x1a6   :  { %529 = vrot.lane.b32.xlu0 %v99_v50, %s1440_s3 }
 0x1a8   :  { %527 = vrot.lane.b32.xlu1 %v98_v51, %s1440_s3 }
 0x1aa   :  { %521 = vrot.lane.b32.xlu0 %v95_v52, %s1440_s3 }
 0x1ac   :  { %525 = vrot.lane.b32.xlu1 %v97_v53, %s1440_s3 }
 0x1ae   :  { %517 = vrot.lane.b32.xlu0 %v93_v54, %s1440_s3 }
 0x1b0   :  { %523 = vrot.lane.b32.xlu1 %v96_v55, %s1440_s3 }
 0x1b4   :  { %519 = vrot.lane.b32.xlu1 %v94_v56, %s1440_s3 }
 0x1b8   :  { %499 = vrot.lane.b32.xlu1 %v100_v38, %s1440_s3 }
 0x214   :  { %v240_v41 = vpop.permute.xlu0 %239 }
 0x215   :  { %1181 = vmatprep.subr.mxu0 %v240_v41 }
 0x216   :  { %1182 = vmatpush3.msra.mxu0 %v240_v41  ;;  %v238_v42 = vpop.permute.xlu1 %237 }
 0x217   :  { %1183 = vmatprep.subr.mxu0 %v238_v42 }
 0x218   :  { %1184 = vmatpush3.msra.mxu0 %v238_v42  ;;  %v530_v16 = vpop.permute.xlu0 %529 }
 0x219   :  { %1186 = vmatmul.mubr.msk.f32.vlgmr.msra.gmra.mxu0 %vm243_vm1, %v1524_v43  ;;  %1216 = vmatprep.subr.mxu0 %v530_v16 }
 0x21a   :  { %1188 = vmatprep.mubr.msk.f32.mxu0 %vm243_vm1, %v102_v44  ;;  %v528_v17 = vpop.permute.xlu1 %527  ;;  %1217 = vmatpush3.msra.mxu0 %v530_v16 }
 0x21b   :  { %1218 = vmatprep.subr.mxu0 %v528_v17 }
 0x21c   :  { %1219 = vmatpush3.msra.mxu0 %v528_v17  ;;  %v522_v20 = vpop.permute.xlu0 %521 }
 0x21d   :  { %1189 = vmatmul.mubr.msk.f32.gmra.mxu0 %vm243_vm1, %v103_v45 }
 0x21e   :  { %1191 = vmatprep.mubr.msk.f32.mxu0 %vm243_vm1, %v104_v46  ;;  %v526_v18 = vpop.permute.xlu1 %525 }
 0x21f   :  { %1220 = vmatprep.subr.mxu0 %v526_v18 }
 0x220   :  { %1221 = vmatpush3.msra.mxu0 %v526_v18  ;;  %v518_v22 = vpop.permute.xlu0 %517 }
 0x221   :  { %1192 = vmatmul.mubr.msk.f32.gmra.mxu0 %vm243_vm1, %v105_v47 }
 0x222   :  { %1194 = vmatprep.mubr.msk.f32.mxu0 %vm243_vm1, %v106_v48  ;;  %v524_v19 = vpop.permute.xlu1 %523 }
 0x223   :  { %1222 = vmatprep.subr.mxu0 %v524_v19 }
 0x224   :  { %1223 = vmatpush3.msra.mxu0 %v524_v19 }
 0x225   :  { %1195 = vmatmul.mubr.msk.f32.gmra.mxu0 %vm243_vm1, %v107_v49  ;;  %1224 = vmatprep.subr.mxu0 %v522_v20 }
 0x226   :  { %1225 = vmatpush3.msra.mxu0 %v522_v20  ;;  %v520_v21 = vpop.permute.xlu1 %519 }
 0x227   :  { %1226 = vmatprep.subr.mxu0 %v520_v21 }
 0x228   :  { %1227 = vmatpush3.msra.mxu0 %v520_v21 }
 0x229   :  { %1228 = vmatprep.subr.mxu0 %v518_v22 }
 0x22a   :  { %1229 = vmatpush3.msra.mxu0 %v518_v22  ;;  %v500_v27 = vpop.permute.xlu1 %499 }
 0x2d9   :  { %v1187_v57 = vpop.f32.mrf.mxu0 }
 0x2da   :  { %v374_v13 = vmul.f32 %v1187_v57, %v93_v54 }
 0x2db   :  { %v334_v58 = vpop.f32.mrf.mxu0 }
 0x2dc   :  { %v373_v15 = vmul.f32 %v334_v58, %v92_v14 }
 0x2dd   :  { %v1190_v59 = vpop.f32.mrf.mxu0 }
 0x2de   :  { %v376_v7 = vmul.f32 %v1190_v59, %v95_v52 }
 0x2df   :  { %v344_v60 = vpop.f32.mrf.mxu0 }
 0x2e0   :  { %v375_v12 = vmul.f32 %v344_v60, %v94_v56  ;;  %v1097_v56 = vld [vmem:[#allocation5 + $0x4] ss:$0 sm:$0xff] }
 0x2e1   :  { %v1193_v61 = vpop.f32.mrf.mxu0 }
 0x2e2   :  { %v378_v5 = vmul.f32 %v1193_v61, %v97_v53 }
 0x2e3   :  { %v354_v62 = vpop.f32.mrf.mxu0 }
 0x2e4   :  { %v377_v6 = vmul.f32 %v354_v62, %v96_v55 }
 0x2e5   :  { %v1196_v63 = vpop.f32.mrf.mxu0 }
 0x2e6   :  { %v380_v2 = vmul.f32 %v1196_v63, %v99_v50 }
 0x2e7   :  { %v364_v3 = vpop.f32.mrf.mxu0 }
 0x2e8   :  { %v379_v4 = vmul.f32 %v364_v3, %v98_v51  ;;  %1197 = vmatprep.subr.msk.mxu1 %vm110_vm0, %v380_v2 }
 0x2e9   :  { %1198 = vmatpush3.xpose.msk.msra.mxu1 %vm110_vm0, %v380_v2 }
 0x2ea   :  { %1199 = vmatprep.subr.msk.mxu1 %vm110_vm0, %v379_v4 }
 0x2ed   :  { %1200 = vmatpush3.xpose.msk.msra.mxu1 %vm110_vm0, %v379_v4 }
 0x2ee   :  { %1201 = vmatprep.subr.msk.mxu1 %vm110_vm0, %v378_v5 }
 0x2f1   :  { %1202 = vmatpush3.xpose.msk.msra.mxu1 %vm110_vm0, %v378_v5 }
 0x2f2   :  { %1203 = vmatprep.subr.msk.mxu1 %vm110_vm0, %v377_v6 }
 0x2f5   :  { %1204 = vmatpush3.xpose.msk.msra.mxu1 %vm110_vm0, %v377_v6 }
 0x2f6   :  { %1205 = vmatprep.subr.msk.mxu1 %vm110_vm0, %v376_v7 }
 0x2f9   :  { %1206 = vmatpush3.xpose.msk.msra.mxu1 %vm110_vm0, %v376_v7 }
 0x2fa   :  { %1207 = vmatprep.subr.msk.mxu1 %vm110_vm0, %v375_v12 }
 0x2fd   :  { %1208 = vmatpush3.xpose.msk.msra.mxu1 %vm110_vm0, %v375_v12 }
 0x2fe   :  { %1209 = vmatprep.subr.msk.mxu1 %vm110_vm0, %v374_v13 }
 0x301   :  { %1210 = vmatpush3.xpose.msk.msra.mxu1 %vm110_vm0, %v374_v13 }
 0x302   :  { %1211 = vmatprep.subr.msk.mxu1 %vm110_vm0, %v373_v15 }
 0x305   :  { %1212 = vmatpush3.xpose.msk.msra.mxu1 %vm110_vm0, %v373_v15 }
 0x308   :  { %1214 = vmatmul.mubr.msk.f32.vlgmr.msra.gmra.mxu1 %vm110_vm0, %v1518_v39 }
 0x3c8   :  { %v1215_v23 = vpop.f32.mrf.mxu1 }
 0x3c9   :  { %v488_v24 = vsel %vm484_vm2, %v1215_v23, -inf }
 0x3ca   :  { %489 = vmax.xlane.f32.xlu0 %v488_v24  ;;  %v475_v25 = vpop.f32.mrf.mxu1 }
 0x3cb   :  { %v485_v26 = vsel %vm484_vm2, %v475_v25, -inf }
 0x3cc   :  { %486 = vmax.xlane.f32.xlu1 %v485_v26 }
 0x3dd   :  { %515 = vrot.lane.b32.xlu1 %v92_v14, %s1440_s3 }
 0x3e0   :  { %501 = vrot.lane.b32.xlu0 %v1524_v43, %s1440_s3 }
 0x3e1   :  { %636 = vrot.lane.b32.xlu1 %v379_v4, %s1439_s2 }
 0x3e4   :  { %638 = vrot.lane.b32.xlu0 %v380_v2, %s1439_s2 }
 0x3e5   :  { %632 = vrot.lane.b32.xlu1 %v377_v6, %s1439_s2  ;;  %v86_v6 = vld [vmem:[#allocation7 + $0x38] sm:$0xff] }
 0x3e8   :  { %634 = vrot.lane.b32.xlu0 %v378_v5, %s1439_s2  ;;  %v87_v5 = vld [vmem:[#allocation7 + $0x50] sm:$0xff] }
 0x3e9   :  { %628 = vrot.lane.b32.xlu1 %v375_v12, %s1439_s2  ;;  %v84_v12 = vld [vmem:[#allocation7 + $0x8] sm:$0xff] }
 0x3ec   :  { %630 = vrot.lane.b32.xlu0 %v376_v7, %s1439_s2  ;;  %v85_v7 = vld [vmem:[#allocation7 + $0x20] sm:$0xff] }
 0x3ed   :  { %624 = vrot.lane.b32.xlu1 %v373_v15, %s1439_s2 }
 0x3f0   :  { %626 = vrot.lane.b32.xlu0 %v374_v13, %s1439_s2 }
 0x3f1   :  { %741 = vrot.lane.b32.xlu1 %v1499_v9, %s1441_s13 }
 0x3f4   :  { %743 = vrot.lane.b32.xlu0 %v1497_v8, %s1441_s13 }
 0x3f5   :  { %737 = vrot.lane.b32.xlu1 %v1509_v11, %s1441_s13 }
 0x3f8   :  { %739 = vrot.lane.b32.xlu0 %v1503_v10, %s1441_s13 }
 0x453   :  { %v490_v28 = vpop.xlane.xlu0 %489 }
 0x454   :  { %v492_v29 = vsub.f32 %v1215_v23, %v490_v28 }
 0x455   :  { %v487_v30 = vpop.xlane.xlu1 %486 }
 0x456   :  { %v495_v31 = vmul.f32 1.442695, %v492_v29  ;;  %v491_v32 = vsub.f32 %v475_v25, %v487_v30  ;;  %v1100_v29 = vld [vmem:[#allocation5 + $0x2] ss:$0 sm:$0xff] }
 0x457   :  { %v502_v33 = vpop.permute.xlu0 %501 }
 0x458   :  { %v493_v34 = vmul.f32 1.442695, %v491_v32  ;;  %1305 = vpow2.f32 %v495_v31  ;;  %v1101_v31 = vld [vmem:[#allocation5 + $0x3] ss:$0 sm:$0xff] }
 0x459   :  { %v516_v35 = vpop.permute.xlu1 %515 }
 0x45a   :  { %1307 = vpow2.f32 %v493_v34  ;;  %1230 = vmatprep.subr.mxu0 %v516_v35 }
 0x45b   :  { %v639_v36 = vpop.permute.xlu0 %638  ;;  %1231 = vmatpush3.msra.mxu0 %v516_v35 }
 0x45c   :  { %1235 = vmatprep.subr.mxu0 %v639_v36 }
 0x45d   :  { %v637_v38 = vpop.permute.xlu1 %636 }
 0x45f   :  { %v635_v42 = vpop.permute.xlu0 %634 }
 0x461   :  { %v633_v43 = vpop.permute.xlu1 %632 }
 0x463   :  { %v631_v44 = vpop.permute.xlu0 %630 }
 0x465   :  { %v1306_v37 = vpop.eup %1305  ;;  %v629_v45 = vpop.permute.xlu1 %628 }
 0x466   :  { %v506_v41 = vmul.f32 %v1306_v37, %v502_v33 }
 0x467   :  { %v1308_v39 = vpop.eup %1307  ;;  %v627_v46 = vpop.permute.xlu0 %626 }
 0x468   :  { %v505_v40 = vmul.f32 %v1308_v39, %v500_v27  ;;  %v91_v39 = vld [vmem:[#allocation7 + $0x58] sm:$0xff] }
 0x469   :  { %v625_v47 = vpop.permute.xlu1 %624 }
 0x46a   :  { %1232 = vmatprep.mubr.msk.f32.mxu0 %vm484_vm2, %v505_v40 }
 0x46b   :  { %1233 = vmatmul.mubr.msk.f32.vlgmr.msra.gmra.mxu0 %vm484_vm2, %v506_v41  ;;  %v744_v50 = vpop.permute.xlu0 %743 }
 0x46c   :  { %1236 = vmatpush3.msra.mxu0 %v639_v36  ;;  %1254 = vmatprep.subr.mxu1 %v744_v50 }
 0x46d   :  { %1237 = vmatprep.subr.mxu0 %v637_v38  ;;  %v742_v51 = vpop.permute.xlu1 %741  ;;  %1255 = vmatpush3.msra.mxu1 %v744_v50 }
 0x46e   :  { %1238 = vmatpush3.msra.mxu0 %v637_v38  ;;  %1256 = vmatprep.subr.mxu1 %v742_v51 }
 0x46f   :  { %1239 = vmatprep.subr.mxu0 %v635_v42  ;;  %v740_v52 = vpop.permute.xlu0 %739  ;;  %1257 = vmatpush3.msra.mxu1 %v742_v51 }
 0x470   :  { %1240 = vmatpush3.msra.mxu0 %v635_v42  ;;  %1258 = vmatprep.subr.mxu1 %v740_v52  ;;  %v88_v42 = vld [vmem:[#allocation7 + $0x10] sm:$0xff] }
 0x471   :  { %1241 = vmatprep.subr.mxu0 %v633_v43  ;;  %1259 = vmatpush3.msra.mxu1 %v740_v52  ;;  %v738_v10 = vpop.permute.xlu1 %737 }
 0x472   :  { %1242 = vmatpush3.msra.mxu0 %v633_v43  ;;  %1260 = vmatprep.subr.mxu1 %v738_v10  ;;  %v1102_v43 = vld [vmem:[#allocation5 + $0x6] ss:$0 sm:$0xff] }
 0x473   :  { %1243 = vmatprep.subr.mxu0 %v631_v44  ;;  %1261 = vmatpush3.msra.mxu1 %v738_v10 }
 0x474   :  { %1244 = vmatpush3.msra.mxu0 %v631_v44  ;;  %1276 = vmatprep.subr.mxu1 %v91_v39 }
 0x475   :  { %1245 = vmatprep.subr.mxu0 %v629_v45 }
 0x476   :  { %1246 = vmatpush3.msra.mxu0 %v629_v45 }
 0x477   :  { %1247 = vmatprep.subr.mxu0 %v627_v46 }
 0x478   :  { %1248 = vmatpush3.msra.mxu0 %v627_v46 }
 0x479   :  { %1249 = vmatprep.subr.mxu0 %v625_v47 }
 0x47a   :  { %1250 = vmatpush3.msra.mxu0 %v625_v47 }
 0x47b   :  { %1265 = vmatprep.subr.mxu0 %v87_v5 }
 0x52b   :  { %v1234_v48 = vpop.f32.mrf.mxu0 }
 0x52c   :  { %1309 = vrcp.f32 %v1234_v48 }
 0x52d   :  { %v611_v49 = vpop.f32.mrf.mxu0 }
 0x52e   :  { %1311 = vrcp.f32 %v611_v49 }
 0x539   :  { %v1310_v8 = vpop.eup %1309 }
 0x53a   :  { %v623_v54 = vmul.f32 %v1310_v8, %v506_v41  ;;  %v89_v41 = vld [vmem:[#allocation7 + $0x28] sm:$0xff] }
 0x53b   :  { %v1312_v53 = vpop.eup %1311 }
 0x53c   :  { %v622_v9 = vmul.f32 %v1312_v53, %v505_v40  ;;  %v90_v40 = vld [vmem:[#allocation7 + $0x40] sm:$0xff] }
 0x53e   :  { %1251 = vmatprep.mubr.msk.f32.mxu0 %vm484_vm2, %v622_v9 }
 0x53f   :  { %1252 = vmatmul.mubr.msk.f32.vlgmr.msra.gmra.mxu0 %vm484_vm2, %v623_v54 }
 0x540   :  { %1266 = vmatpush3.msra.mxu0 %v87_v5 }
 0x541   :  { %1267 = vmatprep.subr.mxu0 %v86_v6 }
 0x542   :  { %1268 = vmatpush3.msra.mxu0 %v86_v6 }
 0x543   :  { %1269 = vmatprep.subr.mxu0 %v85_v7 }
 0x544   :  { %1270 = vmatpush3.msra.mxu0 %v85_v7 }
 0x545   :  { %1271 = vmatprep.subr.mxu0 %v84_v12 }
 0x546   :  { %1272 = vmatpush3.msra.mxu0 %v84_v12 }
 0x5ff   :  { %v1253_v11 = vpop.f32.mrf.mxu0 }
 0x601   :  { %v720_v55 = vpop.f32.mrf.mxu0 }
 0x602   :  { %1262 = vmatprep.mubr.msk.f32.mxu1 %vm110_vm0, %v720_v55 }
 0x603   :  { %1263 = vmatmul.mubr.msk.f32.vlgmr.msra.gmra.mxu1 %vm110_vm0, %v1253_v11  ;;  %v1105_v11 = vld [vmem:[#allocation5 + $0x5] ss:$0 sm:$0xff] }
 0x604   :  { %1277 = vmatpush3.xpose.msra.mxu1 %v91_v39 }
 0x605   :  { %1278 = vmatprep.subr.mxu1 %v90_v40 }
 0x608   :  { %1279 = vmatpush3.xpose.msra.mxu1 %v90_v40 }
 0x609   :  { %1280 = vmatprep.subr.mxu1 %v89_v41 }
 0x60c   :  { %1281 = vmatpush3.xpose.msra.mxu1 %v89_v41 }
 0x60d   :  { %1282 = vmatprep.subr.mxu1 %v88_v42 }
 0x610   :  { %1283 = vmatpush3.xpose.msra.mxu1 %v88_v42 }
 0x6c3   :  { %v1264_v57 = vpop.f32.mrf.mxu1 }
 0x6c4   :  { %v827_v58 = vadd.f32 %v1264_v57, %v1097_v56 }
 0x6c5   :  { %v821_v59 = vpop.f32.mrf.mxu1 }
 0x6c6   :  { %v1584_v60 = vadd.f32 %v827_v58, %v1485_v1  ;;  %v822_v61 = vadd.f32 %v1097_v56, %v821_v59 }
 0x6c8   :  { %v1587_v62 = vadd.f32 %v822_v61, %v1483_v0  ;;  %v835_v63 = vsel %vm110_vm0, %v1584_v60, 0.0  ;;  %v841_v1 = vmul.f32 %v1584_v60, %v1584_v60 }
 0x6c9   :  { %836 = vadd.xlane.f32.xlu1 %v835_v63 }
 0x6ca   :  { %v832_v2 = vsel %vm110_vm0, %v1587_v62, 0.0  ;;  %v840_v3 = vmul.f32 %v1587_v62, %v1587_v62  ;;  %v845_v0 = vsel %vm110_vm0, %v841_v1, 0.0 }
 0x6cb   :  { %833 = vadd.xlane.f32.xlu0 %v832_v2 }
 0x6cc   :  { %v842_v4 = vsel %vm110_vm0, %v840_v3, 0.0 }
 0x6cf   :  { %843 = vadd.xlane.f32.xlu0 %v842_v4 }
 0x6d3   :  { %846 = vadd.xlane.f32.xlu0 %v845_v0 }
 0x752   :  { %v837_v15 = vpop.xlane.xlu1 %836 }
 0x753   :  { %v839_v17 = vmul.f32 0.03125, %v837_v15 }
 0x754   :  { %v834_v13 = vpop.xlane.xlu0 %833 }
 0x755   :  { %v838_v14 = vmul.f32 0.03125, %v834_v13  ;;  %v851_v22 = vmul.f32 %v839_v17, %v839_v17  ;;  %v855_v32 = vsub.f32 %v1584_v60, %v839_v17 }
 0x757   :  { %v850_v18 = vmul.f32 %v838_v14, %v838_v14  ;;  %v854_v27 = vsub.f32 %v1587_v62, %v838_v14 }
 0x758   :  { %v844_v16 = vpop.xlane.xlu0 %843 }
 0x759   :  { %v848_v19 = vmul.f32 0.03125, %v844_v16 }
 0x75b   :  { %v852_v20 = vsub.f32 %v848_v19, %v850_v18 }
 0x75c   :  { %v847_v21 = vpop.xlane.xlu0 %846 }
 0x75d   :  { %v856_v23 = vadd.f32 1e-05, %v852_v20  ;;  %v849_v24 = vmul.f32 0.03125, %v847_v21 }
 0x75f   :  { %1313 = vrsqrt.f32 %v856_v23  ;;  %v853_v25 = vsub.f32 %v849_v24, %v851_v22 }
 0x761   :  { %v857_v26 = vadd.f32 1e-05, %v853_v25 }
 0x763   :  { %1315 = vrsqrt.f32 %v857_v26 }
 0x76c   :  { %v1314_v28 = vpop.eup %1313 }
 0x76d   :  { %v860_v30 = vmul.f32 %v1314_v28, %v854_v27 }
 0x76f   :  { %v866_v33 = vmul.f32 %v1100_v29, %v860_v30 }
 0x770   :  { %v1316_v34 = vpop.eup %1315 }
 0x771   :  { %v861_v35 = vmul.f32 %v1316_v34, %v855_v32  ;;  %v872_v36 = vadd.f32 %v1101_v31, %v866_v33 }
 0x773   :  { %v867_v37 = vmul.f32 %v1100_v29, %v861_v35  ;;  %1273 = vmatprep.mubr.msk.f32.mxu0 %vm110_vm0, %v872_v36 }
 0x775   :  { %v873_v38 = vadd.f32 %v1101_v31, %v867_v37 }
 0x777   :  { %1274 = vmatmul.mubr.msk.f32.vlgmr.msra.gmra.mxu0 %vm110_vm0, %v873_v38 }
 0x837   :  { %v1275_v44 = vpop.f32.mrf.mxu0 }
 0x838   :  { %v956_v45 = vadd.f32 %v1275_v44, %v1102_v43 }
 0x839   :  { %v950_v46 = vpop.f32.mrf.mxu0 }
 0x83a   :  { %v962_v47 = vmul.f32 0.70710677, %v956_v45  ;;  %v951_v48 = vadd.f32 %v1102_v43, %v950_v46  ;;  %v960_v9 = vmul.f32 0.5, %v956_v45 }
 0x83c   :  { %1317 = verf.f32 %v962_v47  ;;  %v961_v49 = vmul.f32 0.70710677, %v951_v48  ;;  %v959_v8 = vmul.f32 0.5, %v951_v48 }
 0x83e   :  { %1319 = verf.f32 %v961_v49 }
 0x849   :  { %v1318_v50 = vpop.eup %1317 }
 0x84a   :  { %v966_v52 = vadd.f32 1.0, %v1318_v50 }
 0x84b   :  { %v1320_v51 = vpop.eup %1319 }
 0x84c   :  { %v965_v53 = vadd.f32 1.0, %v1320_v51  ;;  %v968_v10 = vmul.f32 %v966_v52, %v960_v9 }
 0x84e   :  { %v967_v54 = vmul.f32 %v965_v53, %v959_v8 }
 0x850   :  { %1284 = vmatprep.mubr.f32.mxu1 %v967_v54 }
 0x851   :  { %1285 = vmatmul.mubr.f32.vlgmr.msra.gmra.mxu1 %v968_v10 }
 0x911   :  { %v1286_v55 = vpop.f32.mrf.mxu1 }
 0x912   :  { %v1045_v56 = vadd.f32 %v1286_v55, %v1105_v11 }
 0x913   :  { %v1039_v57 = vpop.f32.mrf.mxu1 }
 0x914   :  { %v1049_v58 = vadd.f32 %v1045_v56, %v1584_v60  ;;  %v1040_v59 = vadd.f32 %v1105_v11, %v1039_v57 }
 0x916   :  { %1051 = vst.msk [vmem:[#allocation10 + $0x8] sm:$0xff] %vm110_vm0, %v1049_v58  ;;  %v1048_v61 = vadd.f32 %v1040_v59, %v1587_v62 }
 0x918   :  { %1050 = vst.msk [vmem:[#allocation10] sm:$0xff] %vm110_vm0, %v1048_v61 }
 0x919   :  { %1412 = shalt.err (!%p1409_p10)
}
 0x91a   :  { %1063 = dma.vmem_to_hbm [thread:$0]  %s1058_s15, 256, %s1617_s4, [#allocation4], %s1431_s23, %s1431_s23, %s1432_s24  }
 0x91b   :  { %1427 = dma.done.wait [#allocation4], 256  }
 0x91c   :  { %1428 = vsyncadd [#allocation4], 4294967040 }
 0x91d   :  { %1067 = vsyncpa [#allocation3], 1 }
 0x91e   :  { %1068 = vsyncpa [#allocation6], 1 }
 0x91f   :  { %1069 = vsyncpa [#allocation9], 1 }
 0x920   :  { %1070 = vsyncpa [#allocation4], 1 }

</bundles_post_ra>
